<compile_context>
chip_gen: v6e
topology: v6e:2x2x1
jax: 0.10.0
libtpu: 0.0.40
codegen_flags: <defaults>
</compile_context>

<pallas_src>
import functools

import jax
import jax.numpy as jnp
from jax import lax
from jax.experimental import pallas as pl
from jax.experimental.pallas import tpu as pltpu


def _round_up(x, m):
    return (x + m - 1) // m * m


def _pick_chunk(s_out_p, max_chunk=4096):
    """Largest multiple-of-128 divisor of s_out_p not exceeding max_chunk."""
    if s_out_p <= max_chunk:
        return s_out_p
    for cand in range(max_chunk, 0, -128):
        if s_out_p % cand == 0:
            return cand
    return s_out_p  # unreachable: 128 always divides s_out_p


def conv3x3_relu_kernel(x_ref, w_ref, b_ref, o_ref, *, Wp, chunk, n_chunks):
    """One (batch, Cout-tile) grid step of conv3x3(s=1, p=1) + bias + ReLU.

    x_ref: (1, Cin_p, Sp_in)    bf16 zero-padded image, flat spatial (lane axis)
    w_ref: (9, Cout_t, Cin_p)   bf16 per-tap weights, tap index = kh*3 + kw
    b_ref: (Cout_t, 1)          f32 bias
    o_ref: (1, Cout_t, S_out_p) output, flat spatial in padded-width coordinates
    """
    bias = b_ref[...]                                  # (Cout_t, 1)
    cout_t = o_ref.shape[1]
    for c in range(n_chunks):                          # static unrolled chunk loop
        cbase = c * chunk
        acc = jnp.zeros((cout_t, chunk), jnp.float32)
        for kh in range(3):
            for kw in range(3):
                off = cbase + kh * Wp + kw             # static shift -> tap view
                tap = x_ref[0, :, off:off + chunk]     # (Cin_p, chunk) bf16
                acc += jnp.dot(w_ref[kh * 3 + kw], tap,
                               preferred_element_type=jnp.float32)
        acc += bias                                    # broadcast over lanes
        o_ref[0, :, cbase:cbase + chunk] = jnp.maximum(acc, 0.0).astype(o_ref.dtype)


def conv_block_pallas(x, weight, bias, *, compute_dtype=jnp.bfloat16):
    """ConvBlock forward: conv2d(k=3, s=1, p=1, bias) + ReLU.  NCHW in / NCHW out."""
    N, Cin, H, W = x.shape
    Cout = weight.shape[0]
    Hp, Wp = H + 2, W + 2

    # Flat-spatial geometry (padded-width coordinates).
    S_out = H * Wp                                   # covers all valid output pixels
    S_out_p = _round_up(S_out, 128)                  # lane-dense output
    Sp_in = _round_up(S_out_p + 2 * Wp + 2, 128)     # >= max tap read, >= Hp*Wp

    # Channel padding for full sublane tiles.
    Cin_p = _round_up(Cin, 8)
    Cout_p = _round_up(Cout, 8)
    Cout_t = Cout_p if Cout_p <= 256 else 256
    Cout_p = _round_up(Cout_p, Cout_t)
    n_co = Cout_p // Cout_t

    # ---- operand packing (single cheap XLA pass; NO 9x im2col expansion) -------
    x_pad = jnp.pad(x, ((0, 0), (0, Cin_p - Cin), (1, 1), (1, 1)))    # (N,Cin_p,Hp,Wp)
    x_flat = x_pad.reshape(N, Cin_p, Hp * Wp)
    x_flat = jnp.pad(x_flat, ((0, 0), (0, 0), (0, Sp_in - Hp * Wp)))
    x_flat = x_flat.astype(compute_dtype)

    w_p = jnp.pad(weight, ((0, Cout_p - Cout), (0, Cin_p - Cin), (0, 0), (0, 0)))
    w9 = jnp.transpose(w_p, (2, 3, 0, 1)).reshape(9, Cout_p, Cin_p).astype(compute_dtype)
    b2 = jnp.pad(bias, (0, Cout_p - Cout)).reshape(Cout_p, 1).astype(jnp.float32)

    chunk = _pick_chunk(S_out_p)
    n_chunks = S_out_p // chunk

    # Chip-aware VMEM limit: raise above the v5e/v6e defaults, stay safe on v7x.
    try:
        vmem_cap = int(pltpu.get_tpu_info().vmem_capacity_bytes)
    except Exception:
        vmem_cap = 128 * 1024 * 1024
    vmem_limit = min(96 * 1024 * 1024, vmem_cap * 3 // 4)

    kernel = functools.partial(conv3x3_relu_kernel,
                               Wp=Wp, chunk=chunk, n_chunks=n_chunks)

    out = pl.pallas_call(
        kernel,
        out_shape=jax.ShapeDtypeStruct((N, Cout_p, S_out_p), x.dtype),
        grid_spec=pltpu.PrefetchScalarGridSpec(
            num_scalar_prefetch=0,
            grid=(N, n_co),
            in_specs=[
                pl.BlockSpec((1, Cin_p, Sp_in), lambda n, co: (n, 0, 0)),
                pl.BlockSpec((9, Cout_t, Cin_p), lambda n, co: (0, co, 0)),
                pl.BlockSpec((Cout_t, 1), lambda n, co: (co, 0)),
            ],
            out_specs=pl.BlockSpec((1, Cout_t, S_out_p), lambda n, co: (n, co, 0)),
        ),
        compiler_params=pltpu.CompilerParams(
            dimension_semantics=("parallel", "parallel"),
            vmem_limit_bytes=vmem_limit,
        ),
    )(x_flat, w9, b2)

    # Valid output pixels sit at flat index h*Wp + w with w < W; slice the rest off.
    y = out[:, :Cout, :H * Wp].reshape(N, Cout, H, Wp)[:, :, :, :W]
    return y


if __name__ == "__main__":
    key = jax.random.PRNGKey(0)
    k_x, k_w, k_b = jax.random.split(key, 3)

    N, Cin, H, W = 2, 4, 16, 16
    Cout, ksz = 8, 3

    # Deterministic init mimicking PyTorch Conv2d default (uniform +/- 1/sqrt(fan_in)).
    fan_in = Cin * ksz * ksz
    bound = 1.0 / (fan_in ** 0.5)
    x = jax.random.normal(k_x, (N, Cin, H, W), dtype=jnp.float32)
    weight = jax.random.uniform(k_w, (Cout, Cin, ksz, ksz),
                                minval=-bound, maxval=bound, dtype=jnp.float32)
    bias = jax.random.uniform(k_b, (Cout,), minval=-bound, maxval=bound,
                              dtype=jnp.float32)

    conv_fn = jax.jit(conv_block_pallas)
    out = jax.block_until_ready(conv_fn(x, weight, bias))
    assert out.shape == (N, Cout, H, W)

    def ref_conv_relu(xx, ww, bb):
        y = lax.conv_general_dilated(
            xx, ww, window_strides=(1, 1), padding=((1, 1), (1, 1)),
            dimension_numbers=("NCHW", "OIHW", "NCHW"))
        return jnp.maximum(y + bb[None, :, None, None], 0.0)

    # Strict check against a reference using the same bf16-rounded operands
    # (isolates kernel math from the intentional bf16 operand quantization).
    x_q = x.astype(jnp.bfloat16).astype(jnp.float32)
    w_q = weight.astype(jnp.bfloat16).astype(jnp.float32)
    ref_q = ref_conv_relu(x_q, w_q, bias)
    assert jnp.allclose(out, ref_q, atol=2e-3, rtol=2e-3)

    # Loose check against the full-f32 PyTorch-equivalent reference.
    ref_f32 = ref_conv_relu(x, weight, bias)
    assert jnp.allclose(out, ref_f32, atol=5e-2, rtol=5e-2)

    print("KERNEL_OK")
</pallas_src>

<mosaic_0001>
module attributes {stable_mosaic.version = 11 : i64} {
  func.func @conv3x3_relu_kernel(%arg0: i32, %arg1: i32, %arg2: memref<1x8x512xbf16, #tpu.memory_space<vmem>>, %arg3: memref<9x8x8xbf16, #tpu.memory_space<vmem>>, %arg4: memref<8x1xf32, #tpu.memory_space<vmem>>, %arg5: memref<1x8x384xf32, #tpu.memory_space<vmem>>) attributes {dimension_semantics = [#tpu.dimension_semantics<parallel>, #tpu.dimension_semantics<parallel>], iteration_bounds = array<i64: 2, 1>, scalar_prefetch = 0 : i64, scratch_operands = 0 : i64, tpu.core_type = #tpu.core_type<tc>, window_params = [{transform_indices = @transform_0, window_bounds = array<i64: 1, 8, 512>}, {transform_indices = @transform_1, window_bounds = array<i64: 9, 8, 8>}, {transform_indices = @transform_2, window_bounds = array<i64: 8, 1>}, {transform_indices = @transform_3, window_bounds = array<i64: 1, 8, 384>}]} {
    %c0 = arith.constant 0 : index
    %c0_0 = arith.constant 0 : index
    %0 = vector.load %arg4[%c0, %c0_0] : memref<8x1xf32, #tpu.memory_space<vmem>>, vector<8x1xf32>
    %cst = arith.constant 0.000000e+00 : f32
    %1 = vector.broadcast %cst : f32 to vector<8x384xf32>
    %c0_1 = arith.constant 0 : index
    %c0_2 = arith.constant 0 : index
    %c0_3 = arith.constant 0 : index
    %2 = vector.load %arg2[%c0_1, %c0_2, %c0_3] : memref<1x8x512xbf16, #tpu.memory_space<vmem>>, vector<1x8x384xbf16>
    %3 = vector.shape_cast %2 : vector<1x8x384xbf16> to vector<8x384xbf16>
    %c0_4 = arith.constant 0 : index
    %c0_5 = arith.constant 0 : index
    %c0_6 = arith.constant 0 : index
    %4 = vector.load %arg3[%c0_4, %c0_5, %c0_6] : memref<9x8x8xbf16, #tpu.memory_space<vmem>>, vector<1x8x8xbf16>
    %5 = vector.shape_cast %4 : vector<1x8x8xbf16> to vector<8x8xbf16>
    %cst_7 = arith.constant dense<0.000000e+00> : vector<8x384xf32>
    %6 = tpu.matmul %5, %3, %cst_7 {dimension_numbers = #tpu.dot_dimension_numbers<[1], [0], [0], [1], [0, 0, 1, 1], [], []>} : vector<8x8xbf16>, vector<8x384xbf16>, vector<8x384xf32> -> vector<8x384xf32>
    %7 = arith.addf %1, %6 : vector<8x384xf32>
    %c0_8 = arith.constant 0 : index
    %c0_9 = arith.constant 0 : index
    %c1 = arith.constant 1 : index
    %8 = vector.load %arg2[%c0_8, %c0_9, %c1] : memref<1x8x512xbf16, #tpu.memory_space<vmem>>, vector<1x8x384xbf16>
    %9 = vector.shape_cast %8 : vector<1x8x384xbf16> to vector<8x384xbf16>
    %c1_10 = arith.constant 1 : index
    %c0_11 = arith.constant 0 : index
    %c0_12 = arith.constant 0 : index
    %10 = vector.load %arg3[%c1_10, %c0_11, %c0_12] : memref<9x8x8xbf16, #tpu.memory_space<vmem>>, vector<1x8x8xbf16>
    %11 = vector.shape_cast %10 : vector<1x8x8xbf16> to vector<8x8xbf16>
    %cst_13 = arith.constant dense<0.000000e+00> : vector<8x384xf32>
    %12 = tpu.matmul %11, %9, %cst_13 {dimension_numbers = #tpu.dot_dimension_numbers<[1], [0], [0], [1], [0, 0, 1, 1], [], []>} : vector<8x8xbf16>, vector<8x384xbf16>, vector<8x384xf32> -> vector<8x384xf32>
    %13 = arith.addf %7, %12 : vector<8x384xf32>
    %c0_14 = arith.constant 0 : index
    %c0_15 = arith.constant 0 : index
    %c2 = arith.constant 2 : index
    %14 = vector.load %arg2[%c0_14, %c0_15, %c2] : memref<1x8x512xbf16, #tpu.memory_space<vmem>>, vector<1x8x384xbf16>
    %15 = vector.shape_cast %14 : vector<1x8x384xbf16> to vector<8x384xbf16>
    %c2_16 = arith.constant 2 : index
    %c0_17 = arith.constant 0 : index
    %c0_18 = arith.constant 0 : index
    %16 = vector.load %arg3[%c2_16, %c0_17, %c0_18] : memref<9x8x8xbf16, #tpu.memory_space<vmem>>, vector<1x8x8xbf16>
    %17 = vector.shape_cast %16 : vector<1x8x8xbf16> to vector<8x8xbf16>
    %cst_19 = arith.constant dense<0.000000e+00> : vector<8x384xf32>
    %18 = tpu.matmul %17, %15, %cst_19 {dimension_numbers = #tpu.dot_dimension_numbers<[1], [0], [0], [1], [0, 0, 1, 1], [], []>} : vector<8x8xbf16>, vector<8x384xbf16>, vector<8x384xf32> -> vector<8x384xf32>
    %19 = arith.addf %13, %18 : vector<8x384xf32>
    %c0_20 = arith.constant 0 : index
    %c0_21 = arith.constant 0 : index
    %c18 = arith.constant 18 : index
    %20 = vector.load %arg2[%c0_20, %c0_21, %c18] : memref<1x8x512xbf16, #tpu.memory_space<vmem>>, vector<1x8x384xbf16>
    %21 = vector.shape_cast %20 : vector<1x8x384xbf16> to vector<8x384xbf16>
    %c3 = arith.constant 3 : index
    %c0_22 = arith.constant 0 : index
    %c0_23 = arith.constant 0 : index
    %22 = vector.load %arg3[%c3, %c0_22, %c0_23] : memref<9x8x8xbf16, #tpu.memory_space<vmem>>, vector<1x8x8xbf16>
    %23 = vector.shape_cast %22 : vector<1x8x8xbf16> to vector<8x8xbf16>
    %cst_24 = arith.constant dense<0.000000e+00> : vector<8x384xf32>
    %24 = tpu.matmul %23, %21, %cst_24 {dimension_numbers = #tpu.dot_dimension_numbers<[1], [0], [0], [1], [0, 0, 1, 1], [], []>} : vector<8x8xbf16>, vector<8x384xbf16>, vector<8x384xf32> -> vector<8x384xf32>
    %25 = arith.addf %19, %24 : vector<8x384xf32>
    %c0_25 = arith.constant 0 : index
    %c0_26 = arith.constant 0 : index
    %c19 = arith.constant 19 : index
    %26 = vector.load %arg2[%c0_25, %c0_26, %c19] : memref<1x8x512xbf16, #tpu.memory_space<vmem>>, vector<1x8x384xbf16>
    %27 = vector.shape_cast %26 : vector<1x8x384xbf16> to vector<8x384xbf16>
    %c4 = arith.constant 4 : index
    %c0_27 = arith.constant 0 : index
    %c0_28 = arith.constant 0 : index
    %28 = vector.load %arg3[%c4, %c0_27, %c0_28] : memref<9x8x8xbf16, #tpu.memory_space<vmem>>, vector<1x8x8xbf16>
    %29 = vector.shape_cast %28 : vector<1x8x8xbf16> to vector<8x8xbf16>
    %cst_29 = arith.constant dense<0.000000e+00> : vector<8x384xf32>
    %30 = tpu.matmul %29, %27, %cst_29 {dimension_numbers = #tpu.dot_dimension_numbers<[1], [0], [0], [1], [0, 0, 1, 1], [], []>} : vector<8x8xbf16>, vector<8x384xbf16>, vector<8x384xf32> -> vector<8x384xf32>
    %31 = arith.addf %25, %30 : vector<8x384xf32>
    %c0_30 = arith.constant 0 : index
    %c0_31 = arith.constant 0 : index
    %c20 = arith.constant 20 : index
    %32 = vector.load %arg2[%c0_30, %c0_31, %c20] : memref<1x8x512xbf16, #tpu.memory_space<vmem>>, vector<1x8x384xbf16>
    %33 = vector.shape_cast %32 : vector<1x8x384xbf16> to vector<8x384xbf16>
    %c5 = arith.constant 5 : index
    %c0_32 = arith.constant 0 : index
    %c0_33 = arith.constant 0 : index
    %34 = vector.load %arg3[%c5, %c0_32, %c0_33] : memref<9x8x8xbf16, #tpu.memory_space<vmem>>, vector<1x8x8xbf16>
    %35 = vector.shape_cast %34 : vector<1x8x8xbf16> to vector<8x8xbf16>
    %cst_34 = arith.constant dense<0.000000e+00> : vector<8x384xf32>
    %36 = tpu.matmul %35, %33, %cst_34 {dimension_numbers = #tpu.dot_dimension_numbers<[1], [0], [0], [1], [0, 0, 1, 1], [], []>} : vector<8x8xbf16>, vector<8x384xbf16>, vector<8x384xf32> -> vector<8x384xf32>
    %37 = arith.addf %31, %36 : vector<8x384xf32>
    %c0_35 = arith.constant 0 : index
    %c0_36 = arith.constant 0 : index
    %c36 = arith.constant 36 : index
    %38 = vector.load %arg2[%c0_35, %c0_36, %c36] : memref<1x8x512xbf16, #tpu.memory_space<vmem>>, vector<1x8x384xbf16>
    %39 = vector.shape_cast %38 : vector<1x8x384xbf16> to vector<8x384xbf16>
    %c6 = arith.constant 6 : index
    %c0_37 = arith.constant 0 : index
    %c0_38 = arith.constant 0 : index
    %40 = vector.load %arg3[%c6, %c0_37, %c0_38] : memref<9x8x8xbf16, #tpu.memory_space<vmem>>, vector<1x8x8xbf16>
    %41 = vector.shape_cast %40 : vector<1x8x8xbf16> to vector<8x8xbf16>
    %cst_39 = arith.constant dense<0.000000e+00> : vector<8x384xf32>
    %42 = tpu.matmul %41, %39, %cst_39 {dimension_numbers = #tpu.dot_dimension_numbers<[1], [0], [0], [1], [0, 0, 1, 1], [], []>} : vector<8x8xbf16>, vector<8x384xbf16>, vector<8x384xf32> -> vector<8x384xf32>
    %43 = arith.addf %37, %42 : vector<8x384xf32>
    %c0_40 = arith.constant 0 : index
    %c0_41 = arith.constant 0 : index
    %c37 = arith.constant 37 : index
    %44 = vector.load %arg2[%c0_40, %c0_41, %c37] : memref<1x8x512xbf16, #tpu.memory_space<vmem>>, vector<1x8x384xbf16>
    %45 = vector.shape_cast %44 : vector<1x8x384xbf16> to vector<8x384xbf16>
    %c7 = arith.constant 7 : index
    %c0_42 = arith.constant 0 : index
    %c0_43 = arith.constant 0 : index
    %46 = vector.load %arg3[%c7, %c0_42, %c0_43] : memref<9x8x8xbf16, #tpu.memory_space<vmem>>, vector<1x8x8xbf16>
    %47 = vector.shape_cast %46 : vector<1x8x8xbf16> to vector<8x8xbf16>
    %cst_44 = arith.constant dense<0.000000e+00> : vector<8x384xf32>
    %48 = tpu.matmul %47, %45, %cst_44 {dimension_numbers = #tpu.dot_dimension_numbers<[1], [0], [0], [1], [0, 0, 1, 1], [], []>} : vector<8x8xbf16>, vector<8x384xbf16>, vector<8x384xf32> -> vector<8x384xf32>
    %49 = arith.addf %43, %48 : vector<8x384xf32>
    %c0_45 = arith.constant 0 : index
    %c0_46 = arith.constant 0 : index
    %c38 = arith.constant 38 : index
    %50 = vector.load %arg2[%c0_45, %c0_46, %c38] : memref<1x8x512xbf16, #tpu.memory_space<vmem>>, vector<1x8x384xbf16>
    %51 = vector.shape_cast %50 : vector<1x8x384xbf16> to vector<8x384xbf16>
    %c8 = arith.constant 8 : index
    %c0_47 = arith.constant 0 : index
    %c0_48 = arith.constant 0 : index
    %52 = vector.load %arg3[%c8, %c0_47, %c0_48] : memref<9x8x8xbf16, #tpu.memory_space<vmem>>, vector<1x8x8xbf16>
    %53 = vector.shape_cast %52 : vector<1x8x8xbf16> to vector<8x8xbf16>
    %cst_49 = arith.constant dense<0.000000e+00> : vector<8x384xf32>
    %54 = tpu.matmul %53, %51, %cst_49 {dimension_numbers = #tpu.dot_dimension_numbers<[1], [0], [0], [1], [0, 0, 1, 1], [], []>} : vector<8x8xbf16>, vector<8x384xbf16>, vector<8x384xf32> -> vector<8x384xf32>
    %55 = arith.addf %49, %54 : vector<8x384xf32>
    %56 = vector.broadcast %0 : vector<8x1xf32> to vector<8x384xf32>
    %57 = arith.addf %55, %56 : vector<8x384xf32>
    %cst_50 = arith.constant 0.000000e+00 : f32
    %58 = vector.broadcast %cst_50 : f32 to vector<8x384xf32>
    %59 = arith.maximumf %57, %58 : vector<8x384xf32>
    %c0_51 = arith.constant 0 : index
    %c0_52 = arith.constant 0 : index
    %c0_53 = arith.constant 0 : index
    %60 = vector.load %arg5[%c0_51, %c0_52, %c0_53] : memref<1x8x384xf32, #tpu.memory_space<vmem>>, vector<1x8x384xf32>
    %61 = vector.shape_cast %60 : vector<1x8x384xf32> to vector<8x384xf32>
    %62 = vector.shape_cast %59 : vector<8x384xf32> to vector<1x8x384xf32>
    tpu.vector_store %arg5[%c0_51, %c0_52, %c0_53], %62 {strides = array<i32>} : memref<1x8x384xf32, #tpu.memory_space<vmem>>, vector<1x8x384xf32>,
    return
  }
  func.func @transform_0(%arg0: i32, %arg1: i32) -> (i32, i32, i32) {
    %c0_i32 = arith.constant 0 : i32
    %c0_i32_0 = arith.constant 0 : i32
    %c0_i32_1 = arith.constant 0 : i32
    return %arg0, %c0_i32, %c0_i32_0 : i32, i32, i32
  }
  func.func @transform_1(%arg0: i32, %arg1: i32) -> (i32, i32, i32) {
    %c0_i32 = arith.constant 0 : i32
    %c0_i32_0 = arith.constant 0 : i32
    %c0_i32_1 = arith.constant 0 : i32
    return %c0_i32, %arg1, %c0_i32_0 : i32, i32, i32
  }
  func.func @transform_2(%arg0: i32, %arg1: i32) -> (i32, i32) {
    %c0_i32 = arith.constant 0 : i32
    %c0_i32_0 = arith.constant 0 : i32
    return %arg1, %c0_i32 : i32, i32
  }
  func.func @transform_3(%arg0: i32, %arg1: i32) -> (i32, i32, i32) {
    %c0_i32 = arith.constant 0 : i32
    %c0_i32_0 = arith.constant 0 : i32
    return %arg0, %arg1, %c0_i32 : i32, i32, i32
  }
}

</mosaic_0001>

<bundles_post_ra>
// kernel: conv_block_pallas.1
= control target key start
LH: loop header
LB: loop body
LE: loop exit
PB: predicated region body
PF: predicated region fallthrough
CT: control target
= control target key end

     0   :  { %s1576_s12 = smov 0   ;;  %s1578_s13 = smov 0   ;;  %s1741_s0 = inlined_call_operand.vmem [shape: bf16[2,8,512], index: 0, kind: input, shape index: {}]   ;;  %s1742_s1 = inlined_call_operand.vmem [shape: bf16[9,8,8], index: 1, kind: input, shape index: {}]   ;;  %s1743_s2 = inlined_call_operand.vmem [shape: f32[8,1], index: 2, kind: input, shape index: {}]   ;;  %s1744_s3 = inlined_call_operand.vmem [shape: f32[2,8,384], index: 3, kind: output, shape index: {}]  }
   0x1   :  { %s1580_s14 = smov 0  }
   0x2 LB: > { %s25_s15 = sadd.s32 1, %s1539_s13  ;;  %p1358_p0 = scmp.ge.s32.totalorder %s1543_s14, 1  ;;  %s1543_s14 = sphi %s1580_s14, %s13_s14   ;;  %s1539_s13 = sphi %s1578_s13, %s1746_s13   ;;  %s1535_s12 = sphi %s1576_s12, %s1745_s12  }
   0x3   : > { %p27_p1 = scmp.ge.s32.totalorder %s25_s15, 2  ;;  %p169_p2 = scmp.lt.s32.totalorder %s1543_s14, 3 }
   0x5   : > { %s1748_s15 = smov (%p27_p1, %s25_s15), 0  ;;  %p170_p3 = pnand %p1358_p0, %p169_p2 }
   0x6   : > { %p205_p4 = scmp.lt.s32.totalorder (!%p170_p3), %s1535_s12, 1  ;;  %s1548_s20 = smov (!%p170_p3), 127  }
   0x7   : > { %173 = sbr.rel (%p170_p3) target bundleno = 408 (0x198), region = 32  ;;  %s1549_s21 = smov (!%p170_p3), 126  }
   0x8   : > { %s1550_s22 = smov (!%p170_p3), 110   ;;  %s1551_s23 = smov (!%p170_p3), 109  }
   0x9   : > { %s1552_s24 = smov (!%p170_p3), 108   ;;  %s1553_s25 = smov (!%p170_p3), 92  }
   0xa   : > { %s1554_s26 = smov (!%p170_p3), 91   ;;  %s1555_s27 = smov (!%p170_p3), 90  }
   0xc   : > { %v1545_v0 = vmov 0.0   ;;  %s1750_s12 = smov (!%p205_p4, %s1535_s12), 1  ;;  %v1546_v1 = vmov 0   ;;  %vm1547_vm0 = vmmov 0   ;;  %v228_v8 = vld [vmem:[%s1743_s2] sm:$0xff]  ;;  %vm254_vm1 = vcmask 1039360  }
   0xd   : > { %1425 = vmatprep.subr.bf16.mxu1 %v1545_v0  ;;  %304 = vmatprep.mubr.bf16.mxu0 %v1546_v1  ;;  %s1406_s16 = sshll.u32 %s1750_s12, 4  ;;  %vm262_vm2 = vcmask 1043456   ;;  %v1362_v19 = vld [vmem:[%s1742_s1 + $0x4] sm:$0xf]  ;;  %vm258_vm3 = vcmask 64512   ;;  %vm464_vm4 = vcmask 1031168  }
   0xe   : > { %1427 = vmatprep.mubr.msk.bf16.mxu1 %vm1547_vm0, %v1545_v0  ;;  %1515 = vset.pattern.permute.xlu0 %v1546_v1  ;;  %s1605_s19 = scalar_lea.vmem %s1741_s0, %s1406_s16  ;;  %v231_v29 = vld [vmem:[%s1742_s1] sm:$0xf]  ;;  %vm574_vm5 = vcmask 900096   ;;  %v1376_v39 = vld [vmem:[%s1742_s1 + $0x8] sm:$0xf]  ;;  %vm684_vm6 = vcmask 891904  }
   0xf   : > { %v233_v2 = vld [vmem:[%s1605_s19 + $0x8] sm:$0xff]  ;;  %v232_v3 = vld [vmem:[%s1605_s19] sm:$0xff]  ;;  %vm794_vm7 = vcmask 883712   ;;  %v1384_v59 = vld [vmem:[%s1742_s1 + $0x10] sm:$0xf]  ;;  %vm904_vm8 = vcmask 752640  }
  0x10   : > { %v1365_v4 = vcombine.low %v233_v2, %v233_v2  ;;  %v1609_v5 = vcombine.low %v232_v3, %v232_v3  ;;  %v1366_v6 = vcombine.high %v233_v2, %v233_v2  ;;  %v1364_v7 = vcombine.high %v232_v3, %v232_v3  ;;  %v1520_v13 = vld [vmem:[%s1605_s19 + $0x8] ss:$0 sps:$4 sm:$0xff]   ;;  %v1380_v49 = vld [vmem:[%s1742_s1 + $0xc] sm:$0xf] }
  0x11   : > { %v371_v23 = vsel %vm262_vm2, %v1520_v13, 0  ;;  %vm1014_vm9 = vcmask 744448   ;;  %vm1124_vm10 = vcmask 736256  }
  0x12   : > { %250 = vrot.lane.b32.xlu1 %v1365_v4, %s1548_s20  ;;  %246 = vrot.lane.b32.xlu0 %v1609_v5, %s1548_s20  ;;  %v365_v21 = vsel %vm262_vm2, %v1609_v5, 0 }
  0x16   : > { %252 = vrot.lane.b32.xlu1 %v1366_v6, %s1548_s20  ;;  %248 = vrot.lane.b32.xlu0 %v1364_v7, %s1548_s20 }
  0x1a   : > { %456 = vrot.lane.b32.xlu0 %v1609_v5, %s1549_s21  ;;  %458 = vrot.lane.b32.xlu1 %v1364_v7, %s1549_s21 }
  0x1e   : > { %460 = vrot.lane.b32.xlu0 %v1365_v4, %s1549_s21  ;;  %462 = vrot.lane.b32.xlu1 %v1366_v6, %s1549_s21 }
  0x22   : > { %566 = vrot.lane.b32.xlu0 %v1609_v5, %s1550_s22  ;;  %568 = vrot.lane.b32.xlu1 %v1364_v7, %s1550_s22 }
  0x26   : > { %570 = vrot.lane.b32.xlu0 %v1365_v4, %s1550_s22  ;;  %572 = vrot.lane.b32.xlu1 %v1366_v6, %s1550_s22 }
  0x2a   : > { %676 = vrot.lane.b32.xlu0 %v1609_v5, %s1551_s23  ;;  %678 = vrot.lane.b32.xlu1 %v1364_v7, %s1551_s23 }
  0x2e   : > { %680 = vrot.lane.b32.xlu0 %v1365_v4, %s1551_s23  ;;  %682 = vrot.lane.b32.xlu1 %v1366_v6, %s1551_s23 }
  0x32   : > { %786 = vrot.lane.b32.xlu0 %v1609_v5, %s1552_s24  ;;  %788 = vrot.lane.b32.xlu1 %v1364_v7, %s1552_s24 }
  0x36   : > { %790 = vrot.lane.b32.xlu0 %v1365_v4, %s1552_s24  ;;  %792 = vrot.lane.b32.xlu1 %v1366_v6, %s1552_s24 }
  0x3a   : > { %896 = vrot.lane.b32.xlu0 %v1609_v5, %s1553_s25  ;;  %898 = vrot.lane.b32.xlu1 %v1364_v7, %s1553_s25 }
  0x3e   : > { %900 = vrot.lane.b32.xlu0 %v1365_v4, %s1553_s25  ;;  %902 = vrot.lane.b32.xlu1 %v1366_v6, %s1553_s25  ;;  %s1479_s25 = smul.u32 24, %s1750_s12 }
  0x40   : > { %s226_s28 = scalar_lea.vmem %s1744_s3, %s1479_s25 }
  0x42   : > { %1006 = vrot.lane.b32.xlu0 %v1609_v5, %s1554_s26  ;;  %1008 = vrot.lane.b32.xlu1 %v1364_v7, %s1554_s26 }
  0x46   : > { %1010 = vrot.lane.b32.xlu0 %v1365_v4, %s1554_s26  ;;  %1012 = vrot.lane.b32.xlu1 %v1366_v6, %s1554_s26 }
  0x4a   : > { %1116 = vrot.lane.b32.xlu0 %v1609_v5, %s1555_s27  ;;  %1118 = vrot.lane.b32.xlu1 %v1364_v7, %s1555_s27 }
  0x4e   : > { %1120 = vrot.lane.b32.xlu0 %v1365_v4, %s1555_s27  ;;  %1122 = vrot.lane.b32.xlu1 %v1366_v6, %s1555_s27 }
  0x52   : > { %1226 = vperm.xlu0 %1515, %v228_v8  }
  0x84   : > { %v251_v9 = vpop.permute.xlu1 %250  ;;  %v247_v10 = vpop.permute.xlu0 %246 }
  0x88   : > { %v253_v11 = vpop.permute.xlu1 %252  ;;  %v249_v12 = vpop.permute.xlu0 %248 }
  0x89   : > { %v256_v14 = vsel %vm254_vm1, %v249_v12, %v251_v9  ;;  %v255_v15 = vsel %vm254_vm1, %v247_v10, %v249_v12  ;;  %v257_v16 = vsel %vm254_vm1, %v251_v9, %v253_v11 }
  0x8a   : > { %1367 = vmatprep.subr.msk.bf16.mxu0 %vm262_vm2, %v256_v14  ;;  %v264_v17 = vsel %vm262_vm2, %v255_v15, 0  ;;  %v270_v18 = vsel %vm262_vm2, %v257_v16, 0 }
  0x8b   : > { %287 = vmatpush1.bf16.msra.mxu0 %v264_v17  ;;  %1426 = vmatpush3.bf16.msra.mxu1 %v270_v18  ;;  %v1392_v17 = vld [vmem:[%s1742_s1 + $0x18] sm:$0xf] }
  0x8c   : > { %v457_v20 = vpop.permute.xlu0 %456  ;;  %1373 = vmatprep.subr.msk.bf16.mxu0 %vm262_vm2, %v1364_v7  ;;  %1431 = vmatprep.subr.bf16.mxu1 %v1545_v0  ;;  %v459_v22 = vpop.permute.xlu1 %458  ;;  %v1388_v7 = vld [vmem:[%s1742_s1 + $0x14] sm:$0xf] }
  0x8d   : > { %v465_v26 = vsel %vm464_vm4, %v457_v20, %v459_v22 }
  0x8e   : > { %1368 = vmatmul.mubr.msk.bf16.vlgmr.msra.gmra.mxu0 %vm258_vm3, %v1362_v19  ;;  %1428 = vmatmul.mubr.msk.bf16.vlgmr.msra.gmra.mxu1 %vm258_vm3, %v1362_v19  ;;  %v472_v30 = vsel %vm262_vm2, %v465_v26, 0 }
  0x8f   : > { %388 = vmatpush1.bf16.msra.mxu0 %v365_v21  ;;  %1432 = vmatpush3.bf16.msra.mxu1 %v371_v23 }
  0x90   : > { %v461_v24 = vpop.permute.xlu0 %460  ;;  %v463_v25 = vpop.permute.xlu1 %462  ;;  %405 = vmatprep.mubr.bf16.mxu0 %v1546_v1  ;;  %1433 = vmatprep.mubr.msk.bf16.mxu1 %vm1547_vm0, %v1545_v0 }
  0x91   : > { %v466_v27 = vsel %vm464_vm4, %v459_v22, %v461_v24  ;;  %v467_v28 = vsel %vm464_vm4, %v461_v24, %v463_v25  ;;  %1437 = vmatprep.subr.bf16.mxu1 %v1545_v0 }
  0x92   : > { %1377 = vmatprep.subr.msk.bf16.mxu0 %vm262_vm2, %v466_v27  ;;  %v478_v31 = vsel %vm262_vm2, %v467_v28, 0  ;;  %v1396_v27 = vld [vmem:[%s1742_s1 + $0x1c] sm:$0xf] }
  0x94   : > { %v567_v32 = vpop.permute.xlu0 %566  ;;  %v569_v33 = vpop.permute.xlu1 %568 }
  0x95   : > { %v575_v36 = vsel %vm574_vm5, %v567_v32, %v569_v33 }
  0x96   : > { %1374 = vmatmul.mubr.msk.bf16.vlgmr.msra.gmra.mxu0 %vm258_vm3, %v231_v29  ;;  %1434 = vmatmul.mubr.msk.bf16.vlgmr.msra.gmra.mxu1 %vm258_vm3, %v231_v29  ;;  %v582_v40 = vsel %vm262_vm2, %v575_v36, 0 }
  0x97   : > { %495 = vmatpush1.bf16.msra.mxu0 %v472_v30  ;;  %1438 = vmatpush3.bf16.msra.mxu1 %v478_v31  ;;  %v1400_v30 = vld [vmem:[%s1742_s1 + $0x20] sm:$0xf] }
  0x98   : > { %v571_v34 = vpop.permute.xlu0 %570  ;;  %v573_v35 = vpop.permute.xlu1 %572  ;;  %512 = vmatprep.mubr.bf16.mxu0 %v1546_v1  ;;  %1439 = vmatprep.mubr.msk.bf16.mxu1 %vm1547_vm0, %v1545_v0 }
  0x99   : > { %v576_v37 = vsel %vm574_vm5, %v569_v33, %v571_v34  ;;  %v577_v38 = vsel %vm574_vm5, %v571_v34, %v573_v35  ;;  %1443 = vmatprep.subr.bf16.mxu1 %v1545_v0 }
  0x9a   : > { %1381 = vmatprep.subr.msk.bf16.mxu0 %vm262_vm2, %v576_v37  ;;  %v588_v41 = vsel %vm262_vm2, %v577_v38, 0 }
  0x9c   : > { %v677_v42 = vpop.permute.xlu0 %676  ;;  %v679_v43 = vpop.permute.xlu1 %678 }
  0x9d   : > { %v685_v46 = vsel %vm684_vm6, %v677_v42, %v679_v43 }
  0x9e   : > { %1378 = vmatmul.mubr.msk.bf16.vlgmr.msra.gmra.mxu0 %vm258_vm3, %v1376_v39  ;;  %1440 = vmatmul.mubr.msk.bf16.vlgmr.msra.gmra.mxu1 %vm258_vm3, %v1376_v39  ;;  %v692_v50 = vsel %vm262_vm2, %v685_v46, 0 }
  0x9f   : > { %605 = vmatpush1.bf16.msra.mxu0 %v582_v40  ;;  %1444 = vmatpush3.bf16.msra.mxu1 %v588_v41 }
  0xa0   : > { %v681_v44 = vpop.permute.xlu0 %680  ;;  %v683_v45 = vpop.permute.xlu1 %682  ;;  %622 = vmatprep.mubr.bf16.mxu0 %v1546_v1  ;;  %1445 = vmatprep.mubr.msk.bf16.mxu1 %vm1547_vm0, %v1545_v0 }
  0xa1   : > { %v686_v47 = vsel %vm684_vm6, %v679_v43, %v681_v44  ;;  %v687_v48 = vsel %vm684_vm6, %v681_v44, %v683_v45  ;;  %1449 = vmatprep.subr.bf16.mxu1 %v1545_v0 }
  0xa2   : > { %1385 = vmatprep.subr.msk.bf16.mxu0 %vm262_vm2, %v686_v47  ;;  %v698_v51 = vsel %vm262_vm2, %v687_v48, 0 }
  0xa4   : > { %v787_v52 = vpop.permute.xlu0 %786  ;;  %v789_v53 = vpop.permute.xlu1 %788 }
  0xa5   : > { %v795_v56 = vsel %vm794_vm7, %v787_v52, %v789_v53 }
  0xa6   : > { %1382 = vmatmul.mubr.msk.bf16.vlgmr.msra.gmra.mxu0 %vm258_vm3, %v1380_v49  ;;  %1446 = vmatmul.mubr.msk.bf16.vlgmr.msra.gmra.mxu1 %vm258_vm3, %v1380_v49  ;;  %v802_v60 = vsel %vm262_vm2, %v795_v56, 0 }
  0xa7   : > { %715 = vmatpush1.bf16.msra.mxu0 %v692_v50  ;;  %1450 = vmatpush3.bf16.msra.mxu1 %v698_v51 }
  0xa8   : > { %v791_v54 = vpop.permute.xlu0 %790  ;;  %v793_v55 = vpop.permute.xlu1 %792  ;;  %732 = vmatprep.mubr.bf16.mxu0 %v1546_v1  ;;  %1451 = vmatprep.mubr.msk.bf16.mxu1 %vm1547_vm0, %v1545_v0 }
  0xa9   : > { %v796_v57 = vsel %vm794_vm7, %v789_v53, %v791_v54  ;;  %v797_v58 = vsel %vm794_vm7, %v791_v54, %v793_v55  ;;  %1455 = vmatprep.subr.bf16.mxu1 %v1545_v0 }
  0xaa   : > { %1389 = vmatprep.subr.msk.bf16.mxu0 %vm262_vm2, %v796_v57  ;;  %v808_v61 = vsel %vm262_vm2, %v797_v58, 0 }
  0xac   : > { %v897_v62 = vpop.permute.xlu0 %896  ;;  %v899_v63 = vpop.permute.xlu1 %898 }
  0xad   : > { %v905_v4 = vsel %vm904_vm8, %v897_v62, %v899_v63 }
  0xae   : > { %1386 = vmatmul.mubr.msk.bf16.vlgmr.msra.gmra.mxu0 %vm258_vm3, %v1384_v59  ;;  %1452 = vmatmul.mubr.msk.bf16.vlgmr.msra.gmra.mxu1 %vm258_vm3, %v1384_v59  ;;  %v912_v8 = vsel %vm262_vm2, %v905_v4, 0 }
  0xaf   : > { %825 = vmatpush1.bf16.msra.mxu0 %v802_v60  ;;  %1456 = vmatpush3.bf16.msra.mxu1 %v808_v61 }
  0xb0   : > { %v901_v2 = vpop.permute.xlu0 %900  ;;  %v903_v3 = vpop.permute.xlu1 %902  ;;  %842 = vmatprep.mubr.bf16.mxu0 %v1546_v1  ;;  %1457 = vmatprep.mubr.msk.bf16.mxu1 %vm1547_vm0, %v1545_v0 }
  0xb1   : > { %v906_v5 = vsel %vm904_vm8, %v899_v63, %v901_v2  ;;  %v907_v6 = vsel %vm904_vm8, %v901_v2, %v903_v3  ;;  %1461 = vmatprep.subr.bf16.mxu1 %v1545_v0 }
  0xb2   : > { %1393 = vmatprep.subr.msk.bf16.mxu0 %vm262_vm2, %v906_v5  ;;  %v918_v9 = vsel %vm262_vm2, %v907_v6, 0 }
  0xb4   : > { %v1007_v10 = vpop.permute.xlu0 %1006  ;;  %v1009_v11 = vpop.permute.xlu1 %1008 }
  0xb5   : > { %v1015_v14 = vsel %vm1014_vm9, %v1007_v10, %v1009_v11 }
  0xb6   : > { %1390 = vmatmul.mubr.msk.bf16.vlgmr.msra.gmra.mxu0 %vm258_vm3, %v1388_v7  ;;  %1458 = vmatmul.mubr.msk.bf16.vlgmr.msra.gmra.mxu1 %vm258_vm3, %v1388_v7  ;;  %v1022_v18 = vsel %vm262_vm2, %v1015_v14, 0 }
  0xb7   : > { %935 = vmatpush1.bf16.msra.mxu0 %v912_v8  ;;  %1462 = vmatpush3.bf16.msra.mxu1 %v918_v9 }
  0xb8   : > { %v1011_v12 = vpop.permute.xlu0 %1010  ;;  %v1013_v13 = vpop.permute.xlu1 %1012  ;;  %952 = vmatprep.mubr.bf16.mxu0 %v1546_v1  ;;  %1463 = vmatprep.mubr.msk.bf16.mxu1 %vm1547_vm0, %v1545_v0 }
  0xb9   : > { %v1016_v15 = vsel %vm1014_vm9, %v1009_v11, %v1011_v12  ;;  %v1017_v16 = vsel %vm1014_vm9, %v1011_v12, %v1013_v13  ;;  %1467 = vmatprep.subr.bf16.mxu1 %v1545_v0 }
  0xba   : > { %1397 = vmatprep.subr.msk.bf16.mxu0 %vm262_vm2, %v1016_v15  ;;  %v1028_v19 = vsel %vm262_vm2, %v1017_v16, 0 }
  0xbc   : > { %v1117_v20 = vpop.permute.xlu0 %1116  ;;  %v1119_v21 = vpop.permute.xlu1 %1118 }
  0xbd   : > { %v1125_v24 = vsel %vm1124_vm10, %v1117_v20, %v1119_v21 }
  0xbe   : > { %1394 = vmatmul.mubr.msk.bf16.vlgmr.msra.gmra.mxu0 %vm258_vm3, %v1392_v17  ;;  %1464 = vmatmul.mubr.msk.bf16.vlgmr.msra.gmra.mxu1 %vm258_vm3, %v1392_v17  ;;  %v1132_v28 = vsel %vm262_vm2, %v1125_v24, 0 }
  0xbf   : > { %1045 = vmatpush1.bf16.msra.mxu0 %v1022_v18  ;;  %1468 = vmatpush3.bf16.msra.mxu1 %v1028_v19 }
  0xc0   : > { %v1121_v22 = vpop.permute.xlu0 %1120  ;;  %v1123_v23 = vpop.permute.xlu1 %1122  ;;  %1062 = vmatprep.mubr.bf16.mxu0 %v1546_v1  ;;  %1469 = vmatprep.mubr.msk.bf16.mxu1 %vm1547_vm0, %v1545_v0 }
  0xc1   : > { %v1126_v25 = vsel %vm1124_vm10, %v1119_v21, %v1121_v22  ;;  %v1127_v26 = vsel %vm1124_vm10, %v1121_v22, %v1123_v23  ;;  %1473 = vmatprep.subr.bf16.mxu1 %v1545_v0 }
  0xc2   : > { %1401 = vmatprep.subr.msk.bf16.mxu0 %vm262_vm2, %v1126_v25  ;;  %v1138_v29 = vsel %vm262_vm2, %v1127_v26, 0 }
  0xc6   : > { %1398 = vmatmul.mubr.msk.bf16.vlgmr.msra.gmra.mxu0 %vm258_vm3, %v1396_v27  ;;  %1470 = vmatmul.mubr.msk.bf16.vlgmr.msra.gmra.mxu1 %vm258_vm3, %v1396_v27 }
  0xc7   : > { %1155 = vmatpush1.bf16.msra.mxu0 %v1132_v28  ;;  %1474 = vmatpush3.bf16.msra.mxu1 %v1138_v29 }
  0xc8   : > { %1172 = vmatprep.mubr.bf16.mxu0 %v1546_v1  ;;  %1475 = vmatprep.mubr.msk.bf16.mxu1 %vm1547_vm0, %v1545_v0 }
  0xce   : > { %1402 = vmatmul.mubr.msk.bf16.vlgmr.msra.gmra.mxu0 %vm258_vm3, %v1400_v30  ;;  %1476 = vmatmul.mubr.msk.bf16.vlgmr.msra.gmra.mxu1 %vm258_vm3, %v1400_v30 }
 0x14e   : > { %v306_v31 = vpop.f32.mrf.mxu0  ;;  %v347_v32 = vpop.f32.mrf.mxu1 }
 0x150   : > { %v308_v33 = vpop.f32.mrf.mxu0  ;;  %v1429_v34 = vpop.f32.mrf.mxu1 }
 0x152   : > { %v310_v35 = vpop.f32.mrf.mxu0  ;;  %v350_v36 = vpop.f32.mrf.mxu1 }
 0x154   : > { %v311_v37 = vpop.f32.mrf.mxu0  ;;  %v1430_v38 = vpop.f32.mrf.mxu1 }
 0x156   : > { %v407_v1 = vpop.f32.mrf.mxu0  ;;  %v448_v39 = vpop.f32.mrf.mxu1 }
 0x157   : > { %v408_v19 = vadd.f32 %v407_v1, %v306_v31  ;;  %v449_v20 = vadd.f32 %v448_v39, %v347_v32 }
 0x158   : > { %v409_v40 = vpop.f32.mrf.mxu0  ;;  %v1435_v0 = vpop.f32.mrf.mxu1 }
 0x159   : > { %v410_v23 = vadd.f32 %v409_v40, %v308_v33 }
 0x15a   : > { %v411_v41 = vpop.f32.mrf.mxu0  ;;  %v451_v42 = vpop.f32.mrf.mxu1 }
 0x15c   : > { %v412_v43 = vpop.f32.mrf.mxu0  ;;  %v1436_v44 = vpop.f32.mrf.mxu1 }
 0x15e   : > { %v514_v45 = vpop.f32.mrf.mxu0  ;;  %v555_v46 = vpop.f32.mrf.mxu1 }
 0x15f   : > { %v561_v24 = vadd.f32 %v514_v45, %v408_v19  ;;  %v563_v25 = vadd.f32 %v555_v46, %v449_v20 }
 0x160   : > { %v516_v47 = vpop.f32.mrf.mxu0  ;;  %v1441_v48 = vpop.f32.mrf.mxu1 }
 0x161   : > { %v562_v28 = vadd.f32 %v516_v47, %v410_v23 }
 0x162   : > { %v518_v49 = vpop.f32.mrf.mxu0  ;;  %v558_v50 = vpop.f32.mrf.mxu1 }
 0x163   : > { %v1227_v49 = vpop.permute.xlu0 %1226 }
 0x164   : > { %v519_v51 = vpop.f32.mrf.mxu0  ;;  %v1442_v52 = vpop.f32.mrf.mxu1 }
 0x166   : > { %v624_v53 = vpop.f32.mrf.mxu0  ;;  %v665_v54 = vpop.f32.mrf.mxu1 }
 0x167   : > { %v671_v29 = vadd.f32 %v624_v53, %v561_v24  ;;  %v673_v30 = vadd.f32 %v665_v54, %v563_v25 }
 0x168   : > { %v626_v55 = vpop.f32.mrf.mxu0  ;;  %v1447_v56 = vpop.f32.mrf.mxu1 }
 0x169   : > { %v672_v36 = vadd.f32 %v626_v55, %v562_v28 }
 0x16a   : > { %v628_v57 = vpop.f32.mrf.mxu0  ;;  %v668_v58 = vpop.f32.mrf.mxu1 }
 0x16c   : > { %v629_v59 = vpop.f32.mrf.mxu0  ;;  %v1448_v60 = vpop.f32.mrf.mxu1 }
 0x16e   : > { %v734_v61 = vpop.f32.mrf.mxu0  ;;  %v775_v62 = vpop.f32.mrf.mxu1 }
 0x16f   : > { %v781_v37 = vadd.f32 %v734_v61, %v671_v29  ;;  %v783_v38 = vadd.f32 %v775_v62, %v673_v30 }
 0x170   : > { %v736_v63 = vpop.f32.mrf.mxu0  ;;  %v1453_v2 = vpop.f32.mrf.mxu1 }
 0x171   : > { %v782_v42 = vadd.f32 %v736_v63, %v672_v36 }
 0x172   : > { %v738_v3 = vpop.f32.mrf.mxu0  ;;  %v778_v4 = vpop.f32.mrf.mxu1 }
 0x174   : > { %v739_v5 = vpop.f32.mrf.mxu0  ;;  %v1454_v6 = vpop.f32.mrf.mxu1 }
 0x176   : > { %v844_v7 = vpop.f32.mrf.mxu0  ;;  %v885_v8 = vpop.f32.mrf.mxu1 }
 0x177   : > { %v891_v31 = vadd.f32 %v844_v7, %v781_v37  ;;  %v893_v32 = vadd.f32 %v885_v8, %v783_v38 }
 0x178   : > { %v846_v9 = vpop.f32.mrf.mxu0  ;;  %v1459_v10 = vpop.f32.mrf.mxu1 }
 0x179   : > { %v892_v39 = vadd.f32 %v846_v9, %v782_v42 }
 0x17a   : > { %v848_v11 = vpop.f32.mrf.mxu0  ;;  %v888_v12 = vpop.f32.mrf.mxu1 }
 0x17c   : > { %v849_v13 = vpop.f32.mrf.mxu0  ;;  %v1460_v14 = vpop.f32.mrf.mxu1 }
 0x17e   : > { %v954_v15 = vpop.f32.mrf.mxu0  ;;  %v995_v16 = vpop.f32.mrf.mxu1 }
 0x17f   : > { %v1001_v40 = vadd.f32 %v954_v15, %v891_v31  ;;  %v1003_v43 = vadd.f32 %v995_v16, %v893_v32 }
 0x180   : > { %v956_v17 = vpop.f32.mrf.mxu0  ;;  %v1465_v18 = vpop.f32.mrf.mxu1 }
 0x181   : > { %v1002_v46 = vadd.f32 %v956_v17, %v892_v39 }
 0x182   : > { %v958_v21 = vpop.f32.mrf.mxu0  ;;  %v998_v22 = vpop.f32.mrf.mxu1 }
 0x184   : > { %v959_v26 = vpop.f32.mrf.mxu0  ;;  %v1466_v27 = vpop.f32.mrf.mxu1 }
 0x186   : > { %v1064_v34 = vpop.f32.mrf.mxu0  ;;  %v1105_v35 = vpop.f32.mrf.mxu1 }
 0x187   : > { %v1111_v47 = vadd.f32 %v1064_v34, %v1001_v40  ;;  %v1113_v48 = vadd.f32 %v1105_v35, %v1003_v43 }
 0x188   : > { %v1066_v0 = vpop.f32.mrf.mxu0  ;;  %v1471_v41 = vpop.f32.mrf.mxu1 }
 0x189   : > { %v1112_v52 = vadd.f32 %v1066_v0, %v1002_v46 }
 0x18a   : > { %v1068_v1 = vpop.f32.mrf.mxu0  ;;  %v1108_v33 = vpop.f32.mrf.mxu1 }
 0x18c   : > { %v1069_v44 = vpop.f32.mrf.mxu0  ;;  %v1472_v45 = vpop.f32.mrf.mxu1 }
 0x18e   : > { %v1174_v50 = vpop.f32.mrf.mxu0  ;;  %v1215_v51 = vpop.f32.mrf.mxu1 }
 0x18f   : > { %v1221_v53 = vadd.f32 %v1174_v50, %v1111_v47  ;;  %v1223_v54 = vadd.f32 %v1215_v51, %v1113_v48 }
 0x190   : > { %v1176_v55 = vpop.f32.mrf.mxu0  ;;  %v1477_v56 = vpop.f32.mrf.mxu1 }
 0x191   : > { %v1229_v57 = vadd.f32 %v1227_v49, %v1221_v53  ;;  %v1231_v58 = vadd.f32 %v1227_v49, %v1223_v54  ;;  %v1222_v59 = vadd.f32 %v1176_v55, %v1112_v52 }
 0x192   : > { %v1178_v60 = vpop.f32.mrf.mxu0  ;;  %v1218_v61 = vpop.f32.mrf.mxu1 }
 0x193   : > { %v1232_v62 = vmax.f32 %v1229_v57, 0.0  ;;  %v1234_v63 = vmax.f32 %v1231_v58, 0.0  ;;  %v1230_v2 = vadd.f32 %v1227_v49, %v1222_v59 }
 0x194   : > { %v1179_v3 = vpop.f32.mrf.mxu0  ;;  %v1478_v4 = vpop.f32.mrf.mxu1 }
 0x195   : > { %1235 = vst [vmem:[%s226_s28] sm:$0xff] %v1232_v62  ;;  %1237 = vst [vmem:[%s226_s28 + $0x10] sm:$0xff] %v1234_v63  ;;  %v1233_v5 = vmax.f32 %v1230_v2, 0.0 }
 0x197   : > { %1236 = vst [vmem:[%s226_s28 + $0x8] sm:$0xff] %v1233_v5 }
 0x198 PF: > { %s13_s14 = sadd.s32 1, %s1543_s14   ;;  %s1745_s12 = smov %s1539_s13 }
 0x199   : > { %p10_p5 = scmp.ge.s32.totalorder %s13_s14, 4   ;;  %s1746_s13 = smov %s1748_s15 }
 0x19b   :  { %12 = sbr.rel (!%p10_p5) target bundleno = 2 (0x2), region = 76 }

</bundles_post_ra>
